<compile_context>
chip_gen: v7x
topology: tpu7x:2x2x1
jax: 0.10.0
libtpu: 0.0.40
codegen_flags: <defaults>
</compile_context>

<pallas_src>
import math

import jax
import jax.numpy as jnp
from jax.experimental import pallas as pl
from jax.experimental.pallas import tpu as pltpu

EPS = 1e-5


def residual_block_kernel(x_ref, w1_ref, g1_ref, b1_ref, w2_ref, g2_ref, b2_ref,
                          bm_ref, o_ref, pad_ref):
    # x_ref/o_ref: (1, H, W*Cp)    w*_ref: (3*W*Cp, W*Cp)    g*/b*_ref: (1, W*Cp)
    # bm_ref: (W*Cp, W*Cp) channel-averaging matrix (1/(H*W) where lane%Cp matches)
    # pad_ref: VMEM scratch (H+2, W*Cp) row-padded activation buffer.
    H = x_ref.shape[1]
    WC = x_ref.shape[2]

    # Zero only the two halo rows once per grid step; the interior rows are always
    # written before being read.
    zrow = jnp.zeros((1, WC), jnp.float32)
    pad_ref[0:1, :] = zrow
    pad_ref[H + 1:H + 2, :] = zrow

    bm = bm_ref[...]

    def conv3x3(v, w_ref):
        # v: (H, W*Cp).  Row-above/row-below taps come from the row-padded scratch as
        # plain static slices; the 3x3 spatial taps + channel contraction collapse into
        # a single (H, 3*W*Cp) @ (3*W*Cp, W*Cp) matmul on the MXU.
        pad_ref[1:H + 1, :] = v
        up = pad_ref[0:H, :]          # row h-1 (zero row at h = 0)
        down = pad_ref[2:H + 2, :]    # row h+1 (zero row at h = H-1)
        cat = jnp.concatenate([up, v, down], axis=-1)        # (H, 3*W*Cp), lane-aligned
        return jnp.dot(cat, w_ref[...], preferred_element_type=jnp.float32)

    def instance_norm(y, g_ref, b_ref):
        # Per-channel statistics over all H*W positions, computed in the lane-dense
        # layout.  Two-pass centered variance (numerically safe, always >= 0).
        mean = jnp.dot(jnp.sum(y, axis=0, keepdims=True), bm,
                       preferred_element_type=jnp.float32)    # (1, W*Cp) channel means
        d = y - mean
        var = jnp.dot(jnp.sum(d * d, axis=0, keepdims=True), bm,
                      preferred_element_type=jnp.float32)
        return d * jax.lax.rsqrt(var + EPS) * g_ref[...] + b_ref[...]

    h = conv3x3(x_ref[0].astype(jnp.float32), w1_ref)
    h = instance_norm(h, g1_ref, b1_ref)
    h = jnp.maximum(h, 0.0)                                   # ReLU
    h = conv3x3(h, w2_ref)
    h = instance_norm(h, g2_ref, b2_ref)

    # Residual add: re-read the input tile (already resident in VMEM) at point of use.
    o_ref[0] = (x_ref[0].astype(jnp.float32) + h).astype(o_ref.dtype)


def _pick_padded_channels(C, W):
    """Smallest Cp >= C such that W*Cp is a multiple of 128 (lane-dense), with a cap."""
    g = 128 // math.gcd(W, 128)
    Cp = -(-C // g) * g
    if Cp > max(2 * C, 16):          # awkward W: fall back to plain sublane packing
        Cp = -(-C // 8) * 8
    return Cp


def _make_wbig(w_oihw, W, C, Cp):
    """Block-banded conv weight (3*W*Cp, W*Cp):
    row (dh, w', ci), col (w, co) holds K_hwio[dh, w'-w+1, ci, co] when |w'-w| <= 1,
    else 0 (zero padding along W is folded into the band structure)."""
    k = jnp.transpose(w_oihw, (2, 3, 1, 0)).astype(jnp.float32)      # OIHW -> HWIO
    k = jnp.pad(k, ((0, 0), (0, 0), (0, Cp - C), (0, Cp - C)))       # (3, 3, Cp, Cp)
    wp = jnp.arange(W)[:, None]          # w' (input column)
    wo = jnp.arange(W)[None, :]          # w  (output column)
    dw = wp - wo + 1                     # kernel tap index along W
    valid = (dw >= 0) & (dw <= 2)
    kg = k[:, jnp.clip(dw, 0, 2), :, :]                              # (3, W, W, Cp, Cp)
    kg = jnp.where(valid[None, :, :, None, None], kg, 0.0)
    # -> (dh, w', ci, w, co) -> (3*W*Cp, W*Cp)
    return jnp.transpose(kg, (0, 1, 3, 2, 4)).reshape(3 * W * Cp, W * Cp)


def residual_block(x_nchw, w1_oihw, g1, b1, w2_oihw, g2, b2):
    N, C, H, W = x_nchw.shape
    Cp = _pick_padded_channels(C, W)
    WC = W * Cp

    # NCHW -> (N, H, W*Cp) lane-dense slabs (zero-padded channels).
    xp = jnp.transpose(x_nchw, (0, 2, 3, 1))
    xp = jnp.pad(xp, ((0, 0), (0, 0), (0, 0), (0, Cp - C)))
    xp = xp.reshape(N, H, WC).astype(jnp.float32)

    w1b = _make_wbig(w1_oihw, W, C, Cp)
    w2b = _make_wbig(w2_oihw, W, C, Cp)

    def tile_affine(v):
        vp = jnp.concatenate([v.astype(jnp.float32), jnp.zeros((Cp - C,), jnp.float32)])
        return jnp.tile(vp, W).reshape(1, WC)

    g1t, b1t, g2t, b2t = (tile_affine(v) for v in (g1, b1, g2, b2))

    # Channel-averaging matrix: aggregates over w per channel and broadcasts back.
    idx = jnp.arange(WC)
    bm = jnp.where((idx[:, None] % Cp) == (idx[None, :] % Cp),
                   1.0 / (H * W), 0.0).astype(jnp.float32)

    out = pl.pallas_call(
        residual_block_kernel,
        out_shape=jax.ShapeDtypeStruct((N, H, WC), jnp.float32),
        grid_spec=pltpu.PrefetchScalarGridSpec(
            num_scalar_prefetch=0,
            grid=(N,),
            in_specs=[
                pl.BlockSpec((1, H, WC), lambda b: (b, 0, 0)),        # x
                pl.BlockSpec((3 * WC, WC), lambda b: (0, 0)),         # conv1 weight
                pl.BlockSpec((1, WC), lambda b: (0, 0)),              # gamma1
                pl.BlockSpec((1, WC), lambda b: (0, 0)),              # beta1
                pl.BlockSpec((3 * WC, WC), lambda b: (0, 0)),         # conv2 weight
                pl.BlockSpec((1, WC), lambda b: (0, 0)),              # gamma2
                pl.BlockSpec((1, WC), lambda b: (0, 0)),              # beta2
                pl.BlockSpec((WC, WC), lambda b: (0, 0)),             # channel-avg matrix
            ],
            out_specs=pl.BlockSpec((1, H, WC), lambda b: (b, 0, 0)),
            scratch_shapes=[pltpu.VMEM((H + 2, WC), jnp.float32)],
        ),
        compiler_params=pltpu.CompilerParams(
            dimension_semantics=("parallel",),          # batch samples independent
            vmem_limit_bytes=32 * 1024 * 1024,
        ),
    )(xp, w1b, g1t, b1t, w2b, g2t, b2t, bm)

    out = out.reshape(N, H, W, Cp)[..., :C]
    return jnp.transpose(out, (0, 3, 1, 2)).astype(x_nchw.dtype)


def reference(x_nchw, w1, g1, b1, w2, g2, b2):
    """Pure-JAX reference mirroring the PyTorch module (training-mode forward)."""
    def conv(x, w):
        return jax.lax.conv_general_dilated(
            x, w, window_strides=(1, 1), padding=((1, 1), (1, 1)),
            dimension_numbers=("NCHW", "OIHW", "NCHW"),
            precision=jax.lax.Precision.HIGHEST)

    def inorm(y, g, b):
        mean = jnp.mean(y, axis=(2, 3), keepdims=True)
        var = jnp.var(y, axis=(2, 3), keepdims=True)
        return ((y - mean) * jax.lax.rsqrt(var + EPS)
                * g.reshape(1, -1, 1, 1) + b.reshape(1, -1, 1, 1))

    h = conv(x_nchw, w1)
    h = inorm(h, g1, b1)
    h = jnp.maximum(h, 0.0)
    h = conv(h, w2)
    h = inorm(h, g2, b2)
    return x_nchw + h


if __name__ == "__main__":
    key = jax.random.PRNGKey(0)
    ks = jax.random.split(key, 7)

    # ResidualBlock requires in_channels == out_channels for the skip connection.
    N, C, H, W = 2, 4, 16, 16

    x = jax.random.normal(ks[0], (N, C, H, W), jnp.float32)

    fan_in = C * 3 * 3
    bound = 1.0 / jnp.sqrt(fan_in)
    w1 = jax.random.uniform(ks[1], (C, C, 3, 3), jnp.float32, -bound, bound)
    w2 = jax.random.uniform(ks[2], (C, C, 3, 3), jnp.float32, -bound, bound)
    g1 = 1.0 + 0.1 * jax.random.normal(ks[3], (C,), jnp.float32)
    b1 = 0.1 * jax.random.normal(ks[4], (C,), jnp.float32)
    g2 = 1.0 + 0.1 * jax.random.normal(ks[5], (C,), jnp.float32)
    b2 = 0.1 * jax.random.normal(ks[6], (C,), jnp.float32)

    out = residual_block(x, w1, g1, b1, w2, g2, b2)
    out = jax.block_until_ready(out)

    ref = reference(x, w1, g1, b1, w2, g2, b2)
    max_err = float(jnp.max(jnp.abs(out - ref)))
    assert jnp.allclose(out, ref, atol=2e-4, rtol=2e-4), f"max abs err {max_err}"

    print("KERNEL_OK")
</pallas_src>

<mosaic_0001>
module attributes {stable_mosaic.version = 11 : i64} {
  func.func @residual_block_kernel(%arg0: i32, %arg1: memref<1x16x128xf32, #tpu.memory_space<vmem>>, %arg2: memref<384x128xf32, #tpu.memory_space<vmem>>, %arg3: memref<1x128xf32, #tpu.memory_space<vmem>>, %arg4: memref<1x128xf32, #tpu.memory_space<vmem>>, %arg5: memref<384x128xf32, #tpu.memory_space<vmem>>, %arg6: memref<1x128xf32, #tpu.memory_space<vmem>>, %arg7: memref<1x128xf32, #tpu.memory_space<vmem>>, %arg8: memref<128x128xf32, #tpu.memory_space<vmem>>, %arg9: memref<1x16x128xf32, #tpu.memory_space<vmem>>, %arg10: memref<18x128xf32, #tpu.memory_space<vmem>>) attributes {dimension_semantics = [#tpu.dimension_semantics<parallel>], iteration_bounds = array<i64: 2>, scalar_prefetch = 0 : i64, scratch_operands = 1 : i64, tpu.core_type = #tpu.core_type<tc>, window_params = [{transform_indices = @transform_0, window_bounds = array<i64: 1, 16, 128>}, {pipeline_mode = #tpu.pipeline_mode<synchronous>, transform_indices = @transform_1, window_bounds = array<i64: 384, 128>}, {pipeline_mode = #tpu.pipeline_mode<synchronous>, transform_indices = @transform_2, window_bounds = array<i64: 1, 128>}, {pipeline_mode = #tpu.pipeline_mode<synchronous>, transform_indices = @transform_3, window_bounds = array<i64: 1, 128>}, {pipeline_mode = #tpu.pipeline_mode<synchronous>, transform_indices = @transform_4, window_bounds = array<i64: 384, 128>}, {pipeline_mode = #tpu.pipeline_mode<synchronous>, transform_indices = @transform_5, window_bounds = array<i64: 1, 128>}, {pipeline_mode = #tpu.pipeline_mode<synchronous>, transform_indices = @transform_6, window_bounds = array<i64: 1, 128>}, {pipeline_mode = #tpu.pipeline_mode<synchronous>, transform_indices = @transform_7, window_bounds = array<i64: 128, 128>}, {transform_indices = @transform_8, window_bounds = array<i64: 1, 16, 128>}]} {
    %cst = arith.constant 0.000000e+00 : f32
    %0 = vector.broadcast %cst : f32 to vector<1x128xf32>
    %c0 = arith.constant 0 : index
    %c0_0 = arith.constant 0 : index
    %1 = vector.load %arg10[%c0, %c0_0] : memref<18x128xf32, #tpu.memory_space<vmem>>, vector<1x128xf32>
    tpu.vector_store %arg10[%c0, %c0_0], %0 {strides = array<i32>} : memref<18x128xf32, #tpu.memory_space<vmem>>, vector<1x128xf32>,
    %c17 = arith.constant 17 : index
    %c0_1 = arith.constant 0 : index
    %2 = vector.load %arg10[%c17, %c0_1] : memref<18x128xf32, #tpu.memory_space<vmem>>, vector<1x128xf32>
    tpu.vector_store %arg10[%c17, %c0_1], %0 {strides = array<i32>} : memref<18x128xf32, #tpu.memory_space<vmem>>, vector<1x128xf32>,
    %c0_2 = arith.constant 0 : index
    %c0_3 = arith.constant 0 : index
    %3 = vector.load %arg8[%c0_2, %c0_3] : memref<128x128xf32, #tpu.memory_space<vmem>>, vector<128x128xf32>
    %c0_4 = arith.constant 0 : index
    %c0_5 = arith.constant 0 : index
    %c0_6 = arith.constant 0 : index
    %4 = vector.load %arg1[%c0_4, %c0_5, %c0_6] : memref<1x16x128xf32, #tpu.memory_space<vmem>>, vector<1x16x128xf32>
    %5 = vector.shape_cast %4 : vector<1x16x128xf32> to vector<16x128xf32>
    %c1 = arith.constant 1 : index
    %c0_7 = arith.constant 0 : index
    %6 = vector.load %arg10[%c1, %c0_7] : memref<18x128xf32, #tpu.memory_space<vmem>>, vector<16x128xf32>
    tpu.vector_store %arg10[%c1, %c0_7], %5 {strides = array<i32>} : memref<18x128xf32, #tpu.memory_space<vmem>>, vector<16x128xf32>,
    %c0_8 = arith.constant 0 : index
    %c0_9 = arith.constant 0 : index
    %7 = vector.load %arg10[%c0_8, %c0_9] : memref<18x128xf32, #tpu.memory_space<vmem>>, vector<16x128xf32>
    %c2 = arith.constant 2 : index
    %c0_10 = arith.constant 0 : index
    %8 = vector.load %arg10[%c2, %c0_10] : memref<18x128xf32, #tpu.memory_space<vmem>>, vector<16x128xf32>
    %9 = tpu.concatenate %7, %5, %8 in 1 : vector<16x128xf32>, vector<16x128xf32>, vector<16x128xf32> -> vector<16x384xf32>
    %c0_11 = arith.constant 0 : index
    %c0_12 = arith.constant 0 : index
    %10 = vector.load %arg2[%c0_11, %c0_12] : memref<384x128xf32, #tpu.memory_space<vmem>>, vector<384x128xf32>
    %cst_13 = arith.constant dense<0.000000e+00> : vector<16x128xf32>
    %11 = tpu.matmul %9, %10, %cst_13 {dimension_numbers = #tpu.dot_dimension_numbers<[1], [0], [0], [1], [0, 0, 1, 1], [], []>} : vector<16x384xf32>, vector<384x128xf32>, vector<16x128xf32> -> vector<16x128xf32>
    %cst_14 = arith.constant dense<0.000000e+00> : vector<128xf32>
    %12 = vector.multi_reduction <add>, %11, %cst_14 [0] : vector<16x128xf32> to vector<128xf32>
    %13 = vector.shape_cast %12 : vector<128xf32> to vector<1x128xf32>
    %cst_15 = arith.constant dense<0.000000e+00> : vector<1x128xf32>
    %14 = tpu.matmul %13, %3, %cst_15 {dimension_numbers = #tpu.dot_dimension_numbers<[1], [0], [0], [1], [0, 0, 1, 1], [], []>} : vector<1x128xf32>, vector<128x128xf32>, vector<1x128xf32> -> vector<1x128xf32>
    %15 = vector.broadcast %14 : vector<1x128xf32> to vector<16x128xf32>
    %16 = arith.subf %11, %15 : vector<16x128xf32>
    %17 = arith.mulf %16, %16 : vector<16x128xf32>
    %cst_16 = arith.constant dense<0.000000e+00> : vector<128xf32>
    %18 = vector.multi_reduction <add>, %17, %cst_16 [0] : vector<16x128xf32> to vector<128xf32>
    %19 = vector.shape_cast %18 : vector<128xf32> to vector<1x128xf32>
    %cst_17 = arith.constant dense<0.000000e+00> : vector<1x128xf32>
    %20 = tpu.matmul %19, %3, %cst_17 {dimension_numbers = #tpu.dot_dimension_numbers<[1], [0], [0], [1], [0, 0, 1, 1], [], []>} : vector<1x128xf32>, vector<128x128xf32>, vector<1x128xf32> -> vector<1x128xf32>
    %cst_18 = arith.constant 9.99999974E-6 : f32
    %21 = vector.broadcast %cst_18 : f32 to vector<1x128xf32>
    %22 = arith.addf %20, %21 : vector<1x128xf32>
    %23 = math.rsqrt %22 : vector<1x128xf32>
    %24 = vector.broadcast %23 : vector<1x128xf32> to vector<16x128xf32>
    %25 = arith.mulf %16, %24 : vector<16x128xf32>
    %c0_19 = arith.constant 0 : index
    %c0_20 = arith.constant 0 : index
    %26 = vector.load %arg3[%c0_19, %c0_20] : memref<1x128xf32, #tpu.memory_space<vmem>>, vector<1x128xf32>
    %27 = vector.broadcast %26 : vector<1x128xf32> to vector<16x128xf32>
    %28 = arith.mulf %25, %27 : vector<16x128xf32>
    %c0_21 = arith.constant 0 : index
    %c0_22 = arith.constant 0 : index
    %29 = vector.load %arg4[%c0_21, %c0_22] : memref<1x128xf32, #tpu.memory_space<vmem>>, vector<1x128xf32>
    %30 = vector.broadcast %29 : vector<1x128xf32> to vector<16x128xf32>
    %31 = arith.addf %28, %30 : vector<16x128xf32>
    %cst_23 = arith.constant 0.000000e+00 : f32
    %32 = vector.broadcast %cst_23 : f32 to vector<16x128xf32>
    %33 = arith.maximumf %31, %32 : vector<16x128xf32>
    %c1_24 = arith.constant 1 : index
    %c0_25 = arith.constant 0 : index
    %34 = vector.load %arg10[%c1_24, %c0_25] : memref<18x128xf32, #tpu.memory_space<vmem>>, vector<16x128xf32>
    tpu.vector_store %arg10[%c1_24, %c0_25], %33 {strides = array<i32>} : memref<18x128xf32, #tpu.memory_space<vmem>>, vector<16x128xf32>,
    %c0_26 = arith.constant 0 : index
    %c0_27 = arith.constant 0 : index
    %35 = vector.load %arg10[%c0_26, %c0_27] : memref<18x128xf32, #tpu.memory_space<vmem>>, vector<16x128xf32>
    %c2_28 = arith.constant 2 : index
    %c0_29 = arith.constant 0 : index
    %36 = vector.load %arg10[%c2_28, %c0_29] : memref<18x128xf32, #tpu.memory_space<vmem>>, vector<16x128xf32>
    %37 = tpu.concatenate %35, %33, %36 in 1 : vector<16x128xf32>, vector<16x128xf32>, vector<16x128xf32> -> vector<16x384xf32>
    %c0_30 = arith.constant 0 : index
    %c0_31 = arith.constant 0 : index
    %38 = vector.load %arg5[%c0_30, %c0_31] : memref<384x128xf32, #tpu.memory_space<vmem>>, vector<384x128xf32>
    %cst_32 = arith.constant dense<0.000000e+00> : vector<16x128xf32>
    %39 = tpu.matmul %37, %38, %cst_32 {dimension_numbers = #tpu.dot_dimension_numbers<[1], [0], [0], [1], [0, 0, 1, 1], [], []>} : vector<16x384xf32>, vector<384x128xf32>, vector<16x128xf32> -> vector<16x128xf32>
    %cst_33 = arith.constant dense<0.000000e+00> : vector<128xf32>
    %40 = vector.multi_reduction <add>, %39, %cst_33 [0] : vector<16x128xf32> to vector<128xf32>
    %41 = vector.shape_cast %40 : vector<128xf32> to vector<1x128xf32>
    %cst_34 = arith.constant dense<0.000000e+00> : vector<1x128xf32>
    %42 = tpu.matmul %41, %3, %cst_34 {dimension_numbers = #tpu.dot_dimension_numbers<[1], [0], [0], [1], [0, 0, 1, 1], [], []>} : vector<1x128xf32>, vector<128x128xf32>, vector<1x128xf32> -> vector<1x128xf32>
    %43 = vector.broadcast %42 : vector<1x128xf32> to vector<16x128xf32>
    %44 = arith.subf %39, %43 : vector<16x128xf32>
    %45 = arith.mulf %44, %44 : vector<16x128xf32>
    %cst_35 = arith.constant dense<0.000000e+00> : vector<128xf32>
    %46 = vector.multi_reduction <add>, %45, %cst_35 [0] : vector<16x128xf32> to vector<128xf32>
    %47 = vector.shape_cast %46 : vector<128xf32> to vector<1x128xf32>
    %cst_36 = arith.constant dense<0.000000e+00> : vector<1x128xf32>
    %48 = tpu.matmul %47, %3, %cst_36 {dimension_numbers = #tpu.dot_dimension_numbers<[1], [0], [0], [1], [0, 0, 1, 1], [], []>} : vector<1x128xf32>, vector<128x128xf32>, vector<1x128xf32> -> vector<1x128xf32>
    %cst_37 = arith.constant 9.99999974E-6 : f32
    %49 = vector.broadcast %cst_37 : f32 to vector<1x128xf32>
    %50 = arith.addf %48, %49 : vector<1x128xf32>
    %51 = math.rsqrt %50 : vector<1x128xf32>
    %52 = vector.broadcast %51 : vector<1x128xf32> to vector<16x128xf32>
    %53 = arith.mulf %44, %52 : vector<16x128xf32>
    %c0_38 = arith.constant 0 : index
    %c0_39 = arith.constant 0 : index
    %54 = vector.load %arg6[%c0_38, %c0_39] : memref<1x128xf32, #tpu.memory_space<vmem>>, vector<1x128xf32>
    %55 = vector.broadcast %54 : vector<1x128xf32> to vector<16x128xf32>
    %56 = arith.mulf %53, %55 : vector<16x128xf32>
    %c0_40 = arith.constant 0 : index
    %c0_41 = arith.constant 0 : index
    %57 = vector.load %arg7[%c0_40, %c0_41] : memref<1x128xf32, #tpu.memory_space<vmem>>, vector<1x128xf32>
    %58 = vector.broadcast %57 : vector<1x128xf32> to vector<16x128xf32>
    %59 = arith.addf %56, %58 : vector<16x128xf32>
    %c0_42 = arith.constant 0 : index
    %c0_43 = arith.constant 0 : index
    %c0_44 = arith.constant 0 : index
    %60 = vector.load %arg1[%c0_42, %c0_43, %c0_44] : memref<1x16x128xf32, #tpu.memory_space<vmem>>, vector<1x16x128xf32>
    %61 = vector.shape_cast %60 : vector<1x16x128xf32> to vector<16x128xf32>
    %62 = arith.addf %61, %59 : vector<16x128xf32>
    %c0_45 = arith.constant 0 : index
    %c0_46 = arith.constant 0 : index
    %c0_47 = arith.constant 0 : index
    %63 = vector.load %arg9[%c0_45, %c0_46, %c0_47] : memref<1x16x128xf32, #tpu.memory_space<vmem>>, vector<1x16x128xf32>
    %64 = vector.shape_cast %63 : vector<1x16x128xf32> to vector<16x128xf32>
    %65 = vector.shape_cast %62 : vector<16x128xf32> to vector<1x16x128xf32>
    tpu.vector_store %arg9[%c0_45, %c0_46, %c0_47], %65 {strides = array<i32>} : memref<1x16x128xf32, #tpu.memory_space<vmem>>, vector<1x16x128xf32>,
    return
  }
  func.func @transform_0(%arg0: i32) -> (i32, i32, i32) {
    %c0_i32 = arith.constant 0 : i32
    %c0_i32_0 = arith.constant 0 : i32
    %c0_i32_1 = arith.constant 0 : i32
    return %arg0, %c0_i32, %c0_i32_0 : i32, i32, i32
  }
  func.func @transform_1(%arg0: i32) -> (i32, i32) {
    %c0_i32 = arith.constant 0 : i32
    %c0_i32_0 = arith.constant 0 : i32
    %c0_i32_1 = arith.constant 0 : i32
    return %c0_i32, %c0_i32_0 : i32, i32
  }
  func.func @transform_2(%arg0: i32) -> (i32, i32) {
    %c0_i32 = arith.constant 0 : i32
    %c0_i32_0 = arith.constant 0 : i32
    %c0_i32_1 = arith.constant 0 : i32
    return %c0_i32, %c0_i32_0 : i32, i32
  }
  func.func @transform_3(%arg0: i32) -> (i32, i32) {
    %c0_i32 = arith.constant 0 : i32
    %c0_i32_0 = arith.constant 0 : i32
    %c0_i32_1 = arith.constant 0 : i32
    return %c0_i32, %c0_i32_0 : i32, i32
  }
  func.func @transform_4(%arg0: i32) -> (i32, i32) {
    %c0_i32 = arith.constant 0 : i32
    %c0_i32_0 = arith.constant 0 : i32
    %c0_i32_1 = arith.constant 0 : i32
    return %c0_i32, %c0_i32_0 : i32, i32
  }
  func.func @transform_5(%arg0: i32) -> (i32, i32) {
    %c0_i32 = arith.constant 0 : i32
    %c0_i32_0 = arith.constant 0 : i32
    %c0_i32_1 = arith.constant 0 : i32
    return %c0_i32, %c0_i32_0 : i32, i32
  }
  func.func @transform_6(%arg0: i32) -> (i32, i32) {
    %c0_i32 = arith.constant 0 : i32
    %c0_i32_0 = arith.constant 0 : i32
    %c0_i32_1 = arith.constant 0 : i32
    return %c0_i32, %c0_i32_0 : i32, i32
  }
  func.func @transform_7(%arg0: i32) -> (i32, i32) {
    %c0_i32 = arith.constant 0 : i32
    %c0_i32_0 = arith.constant 0 : i32
    %c0_i32_1 = arith.constant 0 : i32
    return %c0_i32, %c0_i32_0 : i32, i32
  }
  func.func @transform_8(%arg0: i32) -> (i32, i32, i32) {
    %c0_i32 = arith.constant 0 : i32
    %c0_i32_0 = arith.constant 0 : i32
    %c0_i32_1 = arith.constant 0 : i32
    return %arg0, %c0_i32, %c0_i32_0 : i32, i32, i32
  }
}

</mosaic_0001>

<bundles_post_ra>
// kernel: tpu_custom_call.1
= control target key start
LH: loop header
LB: loop body
LE: loop exit
PB: predicated region body
PF: predicated region fallthrough
CT: control target
= control target key end

     0   :  { %13 = vsyncpa [#allocation4], 0  ;;  %s2676_s0 = inlined_call_operand.hbm [shape: f32[2,16,128], index: 0, kind: input, shape index: {}]   ;;  %s2677_s1 = inlined_call_operand.hbm [shape: f32[384,128], index: 1, kind: input, shape index: {}]   ;;  %s2678_s2 = inlined_call_operand.vmem [shape: f32[1,128], index: 2, kind: input, shape index: {}]   ;;  %s2679_s3 = inlined_call_operand.vmem [shape: f32[1,128], index: 3, kind: input, shape index: {}]   ;;  %s2680_s4 = inlined_call_operand.hbm [shape: f32[384,128], index: 4, kind: input, shape index: {}]   ;;  %s2681_s5 = inlined_call_operand.vmem [shape: f32[1,128], index: 5, kind: input, shape index: {}]   ;;  %s2682_s6 = inlined_call_operand.vmem [shape: f32[1,128], index: 6, kind: input, shape index: {}]   ;;  %s2683_s7 = inlined_call_operand.hbm [shape: f32[128,128], index: 7, kind: input, shape index: {}]   ;;  %s2684_s8 = inlined_call_operand.hbm [shape: f32[2,16,128], index: 8, kind: output, shape index: {}]  }
   0x1   :  { %15 = vsyncpa [#allocation4 + $0x1], 0 }
   0x2   :  { %16 = vsyncpa [#allocation7], 0 }
   0x3   :  { %17 = vsyncpa [#allocation10], 0 }
   0x4   :  { %18 = vsyncpa [#allocation5], 0 }
   0x5   :  { %20 = vsyncpa [#allocation5 + $0x1], 0  ;;  %s2269_s27 = smov 0   ;;  %s2271_s28 = smov 0  }
   0x6   :  { %s2273_s29 = smov 0   ;;  %s2275_s30 = smov 0  }
   0x7 LB: > { %2690 = sst [smem:[#allocation16_spill]] %s2198_s27  ;;  %s2290_s9 = sadd.s32 4294967295, %s2210_s30   ;;  %s2210_s30 = sphi %s2275_s30, %s2713_s30   ;;  %s2206_s29 = sphi %s2273_s29, %s2712_s29   ;;  %s2202_s28 = sphi %s2271_s28, %s2711_s28   ;;  %s2198_s27 = sphi %s2269_s27, %s2710_s27  }
   0x8   : > { %s1294_s10 = sadd.s32 4294967294, %s2210_s30   ;;  %p46_p0 = scmp.ne.s32.totalorder %s2202_s28, %s2198_s27 }
   0x9   : > { %p2685_p1 = scmp.eq.s32.totalorder %s2290_s9, 0  ;;  %p223_p3 = scmp.eq.s32.totalorder %s1294_s10, 1 }
   0xa   : > { %p1295_p5 = scmp.ge.s32.totalorder %s2210_s30, 1  ;;  %p230_p7 = scmp.lt.s32.totalorder %s2210_s30, 3 }
   0xb   : > { %p2299_p4 = por %p2685_p1, %p46_p0  ;;  %p2304_p6 = por %p223_p3, %p46_p0 }
   0xc   : > { %p2309_p8 = pnand %p1295_p5, %p230_p7  ;;  %s2212_s14 = smov [#allocation6]  }
   0xd   : > { %s2691_s11 = scalar_select %p2299_p4, 1, 0 }
   0xe   : > { %s2692_s12 = scalar_select %p2304_p6, 1, 0 }
   0xf   : > { %s2694_s13 = scalar_select %p2309_p8, 1, 0 }
  0x10   : > { %2693 = sst [smem:[#allocation17_spill]] %s2692_s12  ;;  %s242_s15 = sshll.u32 %s2212_s14, 4  ;;  %s2313_s15 = int_to_ptr.vmem [resolvable:$true] %s242_s15 }
  0x11   : > { %p1950_p9 = pneg %p2309_p8  ;;  %s2213_s17 = smov [#allocation8]  }
  0x12   : > { %s261_s18 = sshll.u32 %s2213_s17, 4  ;;  %s2214_s19 = smov [#allocation9]   ;;  %s2324_s18 = int_to_ptr.vmem [resolvable:$true] %s261_s18 }
  0x13   : > { %p2320_p11 = pnand %p1950_p9, %p2685_p1  ;;  %s2326_s20 = sshll.u32 %s2214_s19, 4  ;;  %s281_s20 = int_to_ptr.vmem [resolvable:$true] %s2326_s20 }
  0x14   : > { %s2022_s23 = scalar_lea.hbm %s2677_s1, 6144 }
  0x15   : > { %p2023_p12 = scmp.ne.s32.totalorder %s2677_s1, %s2022_s23  ;;  %p2336_p13 = pneg %p2320_p11 }
  0x16   : > { %p2029_p5 = scmp.lt.u32.totalorder %s2022_s23, %s2677_s1 }
  0x17   : > { %p2025_p0 = pnand %p2336_p13, %p2023_p12 }
  0x19   : > { %p2026_p3 = pneg %p2025_p0 }
  0x1b   : > { %p2031_p7 = pnand %p2029_p5, %p2026_p3 }
  0x1d   : > { %2034 = shalt.err (!%p2031_p7)
}
  0x1e   : > { %s2035_s17 = scalar_lea.vmem %s2313_s15, 6144  ;;  %p2043_p2 = scmp.lt.s32.totalorder %s2313_s15, %s2313_s15 }
  0x1f   : > { %p2036_p9 = scmp.ne.s32.totalorder %s2313_s15, %s2035_s17  ;;  %p2044_p6 = scmp.lt.s32.totalorder %s2035_s17, %s2035_s17 }
  0x21   : > { %p2038_p10 = pnand %p2036_p9, %p2336_p13  ;;  %p2045_p12 = por %p2044_p6, %p2043_p2 }
  0x23   : > { %p2039_p1 = pneg %p2038_p10 }
  0x25   : > { %p2046_p0 = pnand %p2045_p12, %p2039_p1 }
  0x27   : > { %2049 = shalt.err (!%p2046_p0)
}
  0x28   : > { %s2215_s19 = smov 128   ;;  %s2216_s21 = smov 8  }
  0x29   : > { %1953 = dma.hbm_to_vmem [thread:$0]  (!%p2320_p11), %s2677_s1, 6144, %s2313_s15, [#allocation7], %s2215_s19, %s2215_s19, %s2216_s21  }
  0x2a   : > { %s2050_s10 = scalar_lea.hbm %s2680_s4, 6144 }
  0x2b   : > { %p2051_p1 = scmp.ne.s32.totalorder %s2680_s4, %s2050_s10  ;;  %p2057_p10 = scmp.lt.u32.totalorder %s2050_s10, %s2680_s4 }
  0x2d   : > { %p2053_p2 = pnand %p2051_p1, %p2336_p13 }
  0x2f   : > { %p2054_p6 = pneg %p2053_p2 }
  0x31   : > { %p2059_p3 = pnand %p2057_p10, %p2054_p6 }
  0x33   : > { %2062 = shalt.err (!%p2059_p3)
}
  0x34   : > { %s2063_s15 = scalar_lea.vmem %s2324_s18, 6144  ;;  %p2071_p12 = scmp.lt.s32.totalorder %s2324_s18, %s2324_s18 }
  0x35   : > { %p2064_p5 = scmp.ne.s32.totalorder %s2324_s18, %s2063_s15  ;;  %p2072_p0 = scmp.lt.s32.totalorder %s2063_s15, %s2063_s15 }
  0x37   : > { %p2066_p7 = pnand %p2064_p5, %p2336_p13  ;;  %p2073_p1 = por %p2072_p0, %p2071_p12 }
  0x39   : > { %p2067_p9 = pneg %p2066_p7 }
  0x3b   : > { %p2074_p2 = pnand %p2073_p1, %p2067_p9 }
  0x3d   : > { %2077 = shalt.err (!%p2074_p2)
}
  0x3e   : > { %1956 = dma.hbm_to_vmem [thread:$0]  (!%p2320_p11), %s2680_s4, 6144, %s2324_s18, [#allocation7], %s2215_s19, %s2215_s19, %s2216_s21  }
  0x3f   : > { %s2078_s24 = scalar_lea.hbm %s2683_s7, 2048 }
  0x40   : > { %p2079_p6 = scmp.ne.s32.totalorder %s2683_s7, %s2078_s24  ;;  %p2085_p5 = scmp.lt.u32.totalorder %s2078_s24, %s2683_s7 }
  0x42   : > { %p2081_p10 = pnand %p2079_p6, %p2336_p13 }
  0x44   : > { %p2082_p3 = pneg %p2081_p10 }
  0x46   : > { %p2087_p7 = pnand %p2085_p5, %p2082_p3 }
  0x48   : > { %2090 = shalt.err (!%p2087_p7)
}
  0x49   : > { %s2091_s15 = scalar_lea.vmem %s281_s20, 2048  ;;  %p2099_p1 = scmp.lt.s32.totalorder %s281_s20, %s281_s20 }
  0x4a   : > { %p2092_p9 = scmp.ne.s32.totalorder %s281_s20, %s2091_s15  ;;  %p2100_p2 = scmp.lt.s32.totalorder %s2091_s15, %s2091_s15 }
  0x4c   : > { %p2094_p12 = pnand %p2092_p9, %p2336_p13  ;;  %p2101_p4 = por %p2100_p2, %p2099_p1 }
  0x4e   : > { %p2095_p0 = pneg %p2094_p12 }
  0x50   : > { %p2102_p8 = pnand %p2101_p4, %p2095_p0 }
  0x52   : > { %2105 = shalt.err (!%p2102_p8)
}
  0x53   : > { %1959 = dma.hbm_to_vmem [thread:$0]  (!%p2320_p11), %s2683_s7, 2048, %s281_s20, [#allocation10], %s2215_s19, %s2215_s19, %s2216_s21  }
  0x54   : > { %s2409_s26 = sadd.s32 1, %s2210_s30   ;;  %s33_s12 = sadd.s32 1, %s2206_s29 }
  0x55   : > { %s30_s16 = ssub.s32 %s2210_s30, %s2409_s26  ;;  %p40_p8 = scmp.ne.s32.totalorder %s2206_s29, %s2202_s28 }
  0x56   : > { %p31_p4 = scmp.eq.s32.totalorder %s30_s16, 0  ;;  %p41_p13 = scmp.eq.s32.totalorder %s2210_s30, 0 }
  0x57   : > { %p1971_p6 = scmp.lt.s32.totalorder %s2210_s30, 2  ;;  %p2697_p3 = scmp.eq.s32.totalorder %s2290_s9, 1 }
  0x58   : > { %s2419_s22 = scalar_select %p31_p4, %s2206_s29, %s33_s12  }
  0x59   : > { %p42_p10 = por %p41_p13, %p40_p8  ;;  %p2423_p5 = por %p2697_p3, %p40_p8 }
  0x5a   : > { %s294_s24 = sand.u32 1, %s2206_s29   ;;  %s1318_s25 = sshll.u32 %s2210_s30, 8 }
  0x5b   : > { %s1300_s20 = sshll.u32 %s294_s24, 4  ;;  %s2432_s17 = scalar_lea.hbm %s2676_s0, %s1318_s25 }
  0x5c   : > { %s298_s15 = scalar_lea.vmem [#allocation3], %s1300_s20  ;;  %p2434_p11 = pnand %p1971_p6, %p42_p10 }
  0x5d   : > { %s305_s18 = sshll.u32 %s298_s15, 4  ;;  %s2440_s16 = scalar_lea.sflag [#allocation4], %s294_s24  ;;  %s2438_s18 = int_to_ptr.vmem [resolvable:$true] %s305_s18 }
  0x5e   : > { %s2106_s12 = scalar_lea.hbm %s2432_s17, 256  ;;  %p2108_p9 = pneg %p2434_p11 }
  0x5f   : > { %p2107_p7 = scmp.ne.s32.totalorder %s2432_s17, %s2106_s12  ;;  %s2111_s10 = scalar_lea.hbm %s2676_s0, 512 }
  0x60   : > { %p2112_p1 = scmp.lt.u32.totalorder %s2432_s17, %s2676_s0  ;;  %p2113_p2 = scmp.lt.u32.totalorder %s2111_s10, %s2106_s12 }
  0x61   : > { %p2109_p12 = pnand %p2108_p9, %p2107_p7  ;;  %p2115_p8 = scmp.lt.u32.totalorder %s2106_s12, %s2432_s17 }
  0x62   : > { %p2114_p4 = por %p2113_p2, %p2112_p1 }
  0x63   : > { %p2110_p0 = pneg %p2109_p12 }
  0x64   : > { %p2116_p13 = por %p2115_p8, %p2114_p4 }
  0x66   : > { %p2117_p6 = pnand %p2116_p13, %p2110_p0 }
  0x68   : > { %2120 = shalt.err (!%p2117_p6)
}
  0x69   : > { %s2121_s24 = scalar_lea.vmem %s2438_s18, 256  ;;  %s2217_s25 = smov [#allocation3]  }
  0x6a   : > { %p2122_p10 = scmp.ne.s32.totalorder %s2438_s18, %s2121_s24  ;;  %s2126_s20 = sshll.u32 %s2217_s25, 4  ;;  %s2127_s20 = int_to_ptr.vmem [resolvable:$false] %s2126_s20 }
  0x6b   : > { %s2128_s14 = scalar_lea.vmem %s2127_s20, 512  ;;  %p2129_p12 = scmp.lt.s32.totalorder %s2438_s18, %s2127_s20 }
  0x6c   : > { %p2124_p3 = pnand %p2122_p10, %p2108_p9  ;;  %p2130_p1 = scmp.lt.s32.totalorder %s2128_s14, %s2121_s24 }
  0x6e   : > { %p2125_p7 = pneg %p2124_p3  ;;  %p2131_p2 = por %p2130_p1, %p2129_p12 }
  0x70   : > { %p2132_p4 = pnand %p2131_p2, %p2125_p7 }
  0x72   : > { %2135 = shalt.err (!%p2132_p4)
}
  0x73   : > { %1963 = dma.hbm_to_vmem [thread:$0]  (!%p2434_p11), %s2432_s17, 256, %s2438_s18, %s2440_s16, %s2215_s19, %s2215_s19, %s2216_s21  }
  0x74   : > { %p2700_p9 = scmp.ne.s32.totalorder %s2694_s13, 0 }
  0x75   : > { %s2474_s12 = sand.u32 (!%p2700_p9), 1, %s2202_s28   ;;  %p2701_p0 = scmp.ne.s32.totalorder (!%p2700_p9), %s2691_s11, 0 }
  0x76   : > { %317 = sbr.rel (%p2700_p9) target bundleno = 1595 (0x63b), region = 52  ;;  %s1304_s10 = sshll.u32 (!%p2700_p9), %s2474_s12, 4 }
  0x77   : > { %s320_s15 = scalar_lea.sflag (!%p2700_p9), [#allocation4], %s2474_s12  ;;  %s2480_s27 = scalar_lea.vmem (!%p2700_p9), [#allocation3], %s1304_s10 }
  0x7d   : > { %2181 = dma.done.wait (%p2701_p0), %s320_s15, 256  }
  0x7e   : > { %2183 = vsyncadd (%p2701_p0), %s320_s15, 4294967040  ;;  %p2702_p11 = scmp.eq.s32.totalorder %s2290_s9, 0 }
  0x80   : > { %2185 = dma.done.wait (%p2702_p11), [#allocation7], 12288   ;;  %p2703_p8 = pmov %p2702_p11 }
  0x82   : > { %2187 = vsyncadd (%p2703_p8), [#allocation7], 4294955008  ;;  %p2704_p13 = pmov %p2703_p8 }
  0x83   : > { %p2705_p6 = pmov %p2703_p8 }
  0x84   : > { %2189 = dma.done.wait (%p2704_p13), [#allocation10], 2048  }
  0x85   : > { %2191 = vsyncadd (%p2705_p6), [#allocation10], 4294965248  ;;  %v2218_v0 = vmov 0.0   ;;  %v410_v1 = vld [vmem:[#allocation6 + $0x80] sm:$0xff]  ;;  %v411_v2 = vld [vmem:[#allocation6 + $0x88] sm:$0xff]  ;;  %vm2220_vm0 = vmmov 0  }
  0x86   : > { %368 = vst [vmem:[#allocation2] sm:$0x1] %v2218_v0  ;;  %369 = vst [vmem:[#allocation2 + $0x11] sm:$0x1] %v2218_v0  ;;  %v394_v3 = vld [vmem:[#allocation6] sm:$0xff]  ;;  %v1710_v4 = vpack.c.bf16 %v411_v2, %v410_v1  ;;  %v395_v5 = vld [vmem:[#allocation6 + $0x8] sm:$0xff] }
  0x87   : > { %v426_v6 = vld [vmem:[#allocation6 + $0x100] sm:$0xff]  ;;  %v427_v7 = vld [vmem:[#allocation6 + $0x108] sm:$0xff]  ;;  %v1712_v8 = vpack.c.bf16 %v395_v5, %v394_v3  ;;  %v412_v10 = vld [vmem:[#allocation6 + $0x90] sm:$0xff]  ;;  %s1319_s25 = sshll.u32 %s2290_s9, 8  ;;  %s367_s20 = scalar_lea.vmem [#allocation11], %s1304_s10 }
  0x88   : > { %v1742_v9 = vpack.c.bf16 %v427_v7, %v426_v6  ;;  %v413_v11 = vld [vmem:[#allocation6 + $0x98] sm:$0xff]  ;;  %v396_v12 = vld [vmem:[#allocation6 + $0x10] sm:$0xff]  ;;  %1711 = vmatprep.subr.bf16.mxu0 %v1710_v4  ;;  %v414_v19 = vld [vmem:[#allocation6 + $0xa0] sm:$0xff]  ;;  %s1192_s14 = sshll.u32 %s367_s20, 4  ;;  %s2628_s11 = scalar_lea.hbm %s2684_s8, %s1319_s25  ;;  %s2630_s14 = int_to_ptr.vmem [resolvable:$true] %s1192_s14 }
  0x89   : > { %v1714_v13 = vpack.c.bf16 %v413_v11, %v412_v10  ;;  %v397_v14 = vld [vmem:[#allocation6 + $0x18] sm:$0xff]  ;;  %v428_v15 = vld [vmem:[#allocation6 + $0x110] sm:$0xff]  ;;  %1713 = vmatpush3.bf16.msra.mxu0 %v1712_v8  ;;  %v415_v20 = vld [vmem:[#allocation6 + $0xa8] sm:$0xff]  ;;  %s1179_s9 = scalar_lea.sflag [#allocation5], %s2474_s12  ;;  %s2136_s10 = scalar_lea.vmem %s2630_s14, 256 }
  0x8a   : > { %v429_v16 = vld [vmem:[#allocation6 + $0x118] sm:$0xff]  ;;  %1743 = vmatprep.subr.bf16.mxu1 %v1742_v9  ;;  %v1716_v17 = vpack.c.bf16 %v397_v14, %v396_v12  ;;  %v398_v21 = vld [vmem:[#allocation6 + $0x20] sm:$0xff]  ;;  %v1718_v22 = vpack.c.bf16 %v415_v20, %v414_v19  ;;  %v399_v23 = vld [vmem:[#allocation6 + $0x28] sm:$0xff]  ;;  %p2137_p10 = scmp.ne.s32.totalorder %s2630_s14, %s2136_s10  ;;  %s2221_s13 = smov [#allocation11]  }
  0x8b   : > { %v1746_v18 = vpack.c.bf16 %v429_v16, %v428_v15  ;;  %1745 = vmatpush3.bf16.msra.mxu1 %v1742_v9  ;;  %1715 = vmatprep.subr.bf16.mxu0 %v1714_v13  ;;  %v430_v24 = vld [vmem:[#allocation6 + $0x120] sm:$0xff]  ;;  %v431_v25 = vld [vmem:[#allocation6 + $0x128] sm:$0xff]  ;;  %v416_v27 = vld [vmem:[#allocation6 + $0xb0] sm:$0xff]  ;;  %v1720_v31 = vpack.c.bf16 %v399_v23, %v398_v21  ;;  %s2140_s19 = sshll.u32 %s2221_s13, 4  ;;  %s2141_s19 = int_to_ptr.vmem [resolvable:$false] %s2140_s19 }
  0x8c   : > { %v1750_v26 = vpack.c.bf16 %v431_v25, %v430_v24  ;;  %v417_v28 = vld [vmem:[#allocation6 + $0xb8] sm:$0xff]  ;;  %v432_v29 = vld [vmem:[#allocation6 + $0x130] sm:$0xff]  ;;  %v418_v36 = vld [vmem:[#allocation6 + $0xc0] sm:$0xff]  ;;  %p2138_p3 = pnand %p2137_p10, %p2423_p5  ;;  %s2142_s21 = scalar_lea.vmem %s2141_s19, 512 }
  0x8d   : > { %1747 = vmatprep.subr.bf16.mxu1 %v1746_v18  ;;  %v433_v30 = vld [vmem:[#allocation6 + $0x138] sm:$0xff]  ;;  %1717 = vmatpush3.bf16.msra.mxu0 %v1716_v17  ;;  %v1722_v32 = vpack.c.bf16 %v417_v28, %v416_v27  ;;  %v400_v33 = vld [vmem:[#allocation6 + $0x30] sm:$0xff]  ;;  %v419_v37 = vld [vmem:[#allocation6 + $0xc8] sm:$0xff]  ;;  %v2219_v17 = vmov 0.0|0.0   ;;  %p2143_p12 = scmp.lt.s32.totalorder %s2630_s14, %s2141_s19  ;;  %p2144_p1 = scmp.lt.s32.totalorder %s2142_s21, %s2136_s10 }
  0x8e   : > { %1719 = vmatprep.subr.bf16.mxu0 %v1718_v22  ;;  %v401_v34 = vld [vmem:[#allocation6 + $0x38] sm:$0xff]  ;;  %v1754_v35 = vpack.c.bf16 %v433_v30, %v432_v29  ;;  %v434_v38 = vld [vmem:[#allocation6 + $0x140] sm:$0xff]  ;;  %v435_v39 = vld [vmem:[#allocation6 + $0x148] sm:$0xff]  ;;  %v1726_v41 = vpack.c.bf16 %v419_v37, %v418_v36  ;;  %p2139_p7 = pneg %p2138_p3 }
  0x8f   : > { %1749 = vmatpush3.bf16.msra.mxu1 %v1746_v18  ;;  %v1724_v40 = vpack.c.bf16 %v401_v34, %v400_v33  ;;  %v402_v42 = vld [vmem:[#allocation6 + $0x40] sm:$0xff]  ;;  %v403_v43 = vld [vmem:[#allocation6 + $0x48] sm:$0xff]  ;;  %v1758_v44 = vpack.c.bf16 %v435_v39, %v434_v38  ;;  %v420_v45 = vld [vmem:[#allocation6 + $0xd0] sm:$0xff]  ;;  %p2145_p2 = por %p2144_p1, %p2143_p12 }
  0x90   : > { %1751 = vmatprep.subr.bf16.mxu1 %v1750_v26  ;;  %v421_v46 = vld [vmem:[#allocation6 + $0xd8] sm:$0xff]  ;;  %v436_v47 = vld [vmem:[#allocation6 + $0x150] sm:$0xff]  ;;  %v1728_v49 = vpack.c.bf16 %v403_v43, %v402_v42  ;;  %v422_v56 = vld [vmem:[#allocation6 + $0xe0] sm:$0xff] }
  0x91   : > { %1721 = vmatpush3.bf16.msra.mxu0 %v1720_v31  ;;  %v437_v48 = vld [vmem:[#allocation6 + $0x158] sm:$0xff]  ;;  %v2497_v50 = vld [vmem:[%s2480_s27] sm:$0xff]  ;;  %v1730_v52 = vpack.c.bf16 %v421_v46, %v420_v45  ;;  %v423_v57 = vld [vmem:[#allocation6 + $0xe8] sm:$0xff]  ;;  %p2146_p4 = pnand %p2145_p2, %p2139_p7 }
  0x92   : > { %1723 = vmatprep.subr.bf16.mxu0 %v1722_v32  ;;  %v2500_v51 = vld [vmem:[%s2480_s27 + $0x8] sm:$0xff]  ;;  %v404_v53 = vld [vmem:[#allocation6 + $0x50] sm:$0xff]  ;;  %388 = vst [vmem:[#allocation2 + $0x1] sm:$0xff] %v2497_v50  ;;  %v1762_v55 = vpack.c.bf16 %v437_v48, %v436_v47  ;;  %506 = vmatprep.mubr.f32.mxu0 %v2497_v50  ;;  %v438_v58 = vld [vmem:[#allocation6 + $0x160] sm:$0xff]  ;;  %v1734_v61 = vpack.c.bf16 %v423_v57, %v422_v56 }
  0x93   : > { %1753 = vmatpush3.bf16.msra.mxu1 %v1750_v26  ;;  %v405_v54 = vld [vmem:[#allocation6 + $0x58] sm:$0xff]  ;;  %389 = vst [vmem:[#allocation2 + $0x9] sm:$0xff] %v2500_v51  ;;  %v439_v59 = vld [vmem:[#allocation6 + $0x168] sm:$0xff]  ;;  %v406_v62 = vld [vmem:[#allocation6 + $0x60] sm:$0xff] }
  0x94   : > { %1755 = vmatprep.subr.bf16.mxu1 %v1754_v35  ;;  %v1732_v60 = vpack.c.bf16 %v405_v54, %v404_v53  ;;  %v407_v63 = vld [vmem:[#allocation6 + $0x68] sm:$0xff]  ;;  %v1766_v1 = vpack.c.bf16 %v439_v59, %v438_v58  ;;  %v424_v2 = vld [vmem:[#allocation6 + $0xf0] sm:$0xff]  ;;  %v425_v3 = vld [vmem:[#allocation6 + $0xf8] sm:$0xff] }
  0x95   : > { %1725 = vmatpush3.bf16.msra.mxu0 %v1724_v40  ;;  %v440_v4 = vld [vmem:[#allocation6 + $0x170] sm:$0xff]  ;;  %v441_v5 = vld [vmem:[#allocation6 + $0x178] sm:$0xff]  ;;  %v1736_v6 = vpack.c.bf16 %v407_v63, %v406_v62  ;;  %v1738_v8 = vpack.c.bf16 %v425_v3, %v424_v2  ;;  %v370_v13 = vld [vmem:[#allocation9] sm:$0xff] }
  0x96   : > { %1727 = vmatprep.subr.bf16.mxu0 %v1726_v41  ;;  %v408_v9 = vld [vmem:[#allocation6 + $0x70] sm:$0xff]  ;;  %v409_v10 = vld [vmem:[#allocation6 + $0x78] sm:$0xff]  ;;  %v1770_v11 = vpack.c.bf16 %v441_v5, %v440_v4  ;;  %v371_v14 = vld [vmem:[#allocation9 + $0x8] sm:$0xff] }
  0x97   : > { %1757 = vmatpush3.bf16.msra.mxu1 %v1754_v35  ;;  %v1740_v12 = vpack.c.bf16 %v409_v10, %v408_v9  ;;  %v2506_v18 = vpack.c.bf16 %v371_v14, %v370_v13  ;;  %v372_v19 = vld [vmem:[#allocation9 + $0x10] sm:$0xff]  ;;  %v373_v20 = vld [vmem:[#allocation9 + $0x18] sm:$0xff]  ;;  %v374_v23 = vld [vmem:[#allocation9 + $0x20] sm:$0xff] }
  0x98   : > { %1759 = vmatprep.subr.bf16.mxu1 %v1758_v44  ;;  %v2511_v22 = vpack.c.bf16 %v373_v20, %v372_v19  ;;  %v375_v24 = vld [vmem:[#allocation9 + $0x28] sm:$0xff]  ;;  %v376_v26 = vld [vmem:[#allocation9 + $0x30] sm:$0xff]  ;;  %v377_v27 = vld [vmem:[#allocation9 + $0x38] sm:$0xff] }
  0x99   : > { %1729 = vmatpush3.bf16.msra.mxu0 %v1728_v49  ;;  %v390_v15 = vld [vmem:[#allocation2] sm:$0xff]  ;;  %v2520_v25 = vpack.c.bf16 %v375_v24, %v374_v23  ;;  %v2526_v28 = vpack.c.bf16 %v377_v27, %v376_v26  ;;  %v378_v29 = vld [vmem:[#allocation9 + $0x40] sm:$0xff]  ;;  %v380_v32 = vld [vmem:[#allocation9 + $0x50] sm:$0xff] }
  0x9a   : > { %1731 = vmatprep.subr.bf16.mxu0 %v1730_v52  ;;  %v392_v7 = vld [vmem:[#allocation2 + $0x2] sm:$0xff]  ;;  %v393_v16 = vld [vmem:[#allocation2 + $0xa] sm:$0xff]  ;;  %v382_v35 = vld [vmem:[#allocation9 + $0x60] sm:$0xff] }
  0x9b   : > { %1761 = vmatpush3.bf16.msra.mxu1 %v1758_v44  ;;  %1532 = vmatprep.mubr.f32.mxu1 %v392_v7  ;;  %v391_v21 = vld [vmem:[#allocation2 + $0x8] sm:$0xff]  ;;  %v379_v30 = vld [vmem:[#allocation9 + $0x48] sm:$0xff]  ;;  %v381_v33 = vld [vmem:[#allocation9 + $0x58] sm:$0xff] }
  0x9c   : > { %1763 = vmatprep.subr.bf16.mxu1 %v1762_v55  ;;  %v2532_v31 = vpack.c.bf16 %v379_v30, %v378_v29  ;;  %v2538_v34 = vpack.c.bf16 %v381_v33, %v380_v32  ;;  %v383_v36 = vld [vmem:[#allocation9 + $0x68] sm:$0xff]  ;;  %v384_v38 = vld [vmem:[#allocation9 + $0x70] sm:$0xff]  ;;  %v385_v39 = vld [vmem:[#allocation9 + $0x78] sm:$0xff] }
  0x9d   : > { %1733 = vmatpush3.bf16.msra.mxu0 %v1732_v60  ;;  %v2544_v37 = vpack.c.bf16 %v383_v36, %v382_v35  ;;  %v2550_v40 = vpack.c.bf16 %v385_v39, %v384_v38  ;;  %v669_v60 = vlaneseq  ;;  %v803_v14 = vld [vmem:[#allocation8 + $0x80] sm:$0xff]  ;;  %v788_v20 = vld [vmem:[#allocation8 + $0x8] sm:$0xff]  ;;  %v805_v27 = vld [vmem:[#allocation8 + $0x90] sm:$0xff] }
  0x9e   : > { %1735 = vmatprep.subr.bf16.mxu0 %v1734_v61  ;;  %v787_v19 = vld [vmem:[#allocation8] sm:$0xff]  ;;  %v820_v24 = vld [vmem:[#allocation8 + $0x108] sm:$0xff]  ;;  %v806_v29 = vld [vmem:[#allocation8 + $0x98] sm:$0xff] }
  0x9f   : > { %1765 = vmatpush3.bf16.msra.mxu1 %v1762_v55  ;;  %v670_v61 = vshrl.u32 %v669_v60, 7  ;;  %v1824_v23 = vpack.c.bf16 %v788_v20, %v787_v19  ;;  %v1826_v30 = vpack.c.bf16 %v806_v29, %v805_v27  ;;  %v789_v32 = vld [vmem:[#allocation8 + $0x10] sm:$0xff]  ;;  %v790_v33 = vld [vmem:[#allocation8 + $0x18] sm:$0xff]  ;;  %v807_v39 = vld [vmem:[#allocation8 + $0xa0] sm:$0xff] }
  0xa0   : > { %1767 = vmatprep.subr.bf16.mxu1 %v1766_v1  ;;  %v821_v35 = vld [vmem:[#allocation8 + $0x110] sm:$0xff]  ;;  %v1828_v36 = vpack.c.bf16 %v790_v33, %v789_v32  ;;  %v822_v38 = vld [vmem:[#allocation8 + $0x118] sm:$0xff]  ;;  %v812_v60 = vld [vmem:[#allocation8 + $0xc8] sm:$0xff] }
  0xa1   : > { %1737 = vmatpush3.bf16.msra.mxu0 %v1736_v6  ;;  %v2558_v62 = vsub.s32 0, %v670_v61  ;;  %v815_v19 = vld [vmem:[#allocation8 + $0xe0] sm:$0xff]  ;;  %v816_v20 = vld [vmem:[#allocation8 + $0xe8] sm:$0xff] }
  0xa2   : > { %1739 = vmatprep.subr.bf16.mxu0 %v1738_v8  ;;  %v800_v27 = vld [vmem:[#allocation8 + $0x68] sm:$0xff]  ;;  %v831_v29 = vld [vmem:[#allocation8 + $0x160] sm:$0xff] }
  0xa3   : > { %1769 = vmatpush3.bf16.msra.mxu1 %v1766_v1  ;;  %v832_v32 = vld [vmem:[#allocation8 + $0x168] sm:$0xff] }
  0xa4   : > { %1771 = vmatprep.subr.bf16.mxu1 %v1770_v11  ;;  %v1878_v33 = vpack.c.bf16 %v832_v32, %v831_v29 }
  0xa5   : > { %1741 = vmatpush3.bf16.msra.mxu0 %v1740_v12 }
  0xa6   : > { %1774 = vmatprep.subr.bf16.mxu0 %v2219_v17 }
  0xa7   : > { %1773 = vmatpush3.bf16.msra.mxu1 %v1770_v11 }
  0xa8   : > { %1798 = vmatprep.subr.bf16.mxu1 %v2219_v17  ;;  %507 = vmatmul.mubr.f32.vlgmr.msra.gmra.mrb[0].mxu0 %v390_v15  ;;  %v804_v15 = vld [vmem:[#allocation8 + $0x88] sm:$0xff] }
  0xa9   : > { %511 = vmatprep.mubr.f32.mxu0 %v2500_v51  ;;  %1776 = vmatpush3.bf16.msra.mxu0 %v2506_v18 }
  0xaa   : > { %1533 = vmatmul.mubr.f32.vlgmr.msra.gmra.mrb[0].mxu1 %v393_v16  ;;  %1777 = vmatprep.subr.bf16.mxu0 %v2219_v17  ;;  %v1822_v16 = vpack.c.bf16 %v804_v15, %v803_v14  ;;  %v797_v15 = vld [vmem:[#allocation8 + $0x50] sm:$0xff] }
  0xab   : > { %1800 = vmatpush3.bf16.msra.mxu1 %v2506_v18  ;;  %1602 = vmatprep.mubr.msk.f32.mxu1 %vm2220_vm0, %v2218_v0 }
  0xac   : > { %1801 = vmatprep.subr.bf16.mxu1 %v2219_v17  ;;  %512 = vmatmul.mubr.f32.gmra.mrb[2].mxu0 %v391_v21  ;;  %v819_v21 = vld [vmem:[#allocation8 + $0x100] sm:$0xff] }
  0xad   : > { %1779 = vmatpush3.bf16.msra.mxu0 %v2511_v22  ;;  %1567 = vmatprep.mubr.msk.f32.mxu0 %vm2220_vm0, %v2218_v0  ;;  %v1854_v26 = vpack.c.bf16 %v820_v24, %v819_v21  ;;  %v1846_v24 = vpack.c.bf16 %v816_v20, %v815_v19 }
  0xae   : > { %1780 = vmatprep.subr.bf16.mxu0 %v2219_v17 }
  0xaf   : > { %1803 = vmatpush3.bf16.msra.mxu1 %v2511_v22 }
  0xb0   : > { %1804 = vmatprep.subr.bf16.mxu1 %v2219_v17 }
  0xb1   : > { %1782 = vmatpush3.bf16.msra.mxu0 %v2520_v25 }
  0xb2   : > { %1783 = vmatprep.subr.bf16.mxu0 %v2219_v17 }
  0xb3   : > { %1806 = vmatpush3.bf16.msra.mxu1 %v2520_v25 }
  0xb4   : > { %1807 = vmatprep.subr.bf16.mxu1 %v2219_v17 }
  0xb5   : > { %1785 = vmatpush3.bf16.msra.mxu0 %v2526_v28 }
  0xb6   : > { %1786 = vmatprep.subr.bf16.mxu0 %v2219_v17 }
  0xb7   : > { %1809 = vmatpush3.bf16.msra.mxu1 %v2526_v28 }
  0xb8   : > { %1810 = vmatprep.subr.bf16.mxu1 %v2219_v17 }
  0xb9   : > { %1788 = vmatpush3.bf16.msra.mxu0 %v2532_v31 }
  0xba   : > { %1789 = vmatprep.subr.bf16.mxu0 %v2219_v17 }
  0xbb   : > { %1812 = vmatpush3.bf16.msra.mxu1 %v2532_v31 }
  0xbc   : > { %1813 = vmatprep.subr.bf16.mxu1 %v2219_v17 }
  0xbd   : > { %1791 = vmatpush3.bf16.msra.mxu0 %v2538_v34 }
  0xbe   : > { %1792 = vmatprep.subr.bf16.mxu0 %v2219_v17 }
  0xbf   : > { %1815 = vmatpush3.bf16.msra.mxu1 %v2538_v34 }
  0xc0   : > { %1816 = vmatprep.subr.bf16.mxu1 %v2219_v17 }
  0xc1   : > { %1794 = vmatpush3.bf16.msra.mxu0 %v2544_v37 }
  0xc2   : > { %1795 = vmatprep.subr.bf16.mxu0 %v2219_v17 }
  0xc3   : > { %1818 = vmatpush3.bf16.msra.mxu1 %v2544_v37 }
  0xc4   : > { %1819 = vmatprep.subr.bf16.mxu1 %v2219_v17 }
  0xc5   : > { %1797 = vmatpush3.bf16.msra.mxu0 %v2550_v40 }
  0xc6   : > { %1823 = vmatprep.subr.bf16.mxu0 %v1822_v16  ;;  %v798_v16 = vld [vmem:[#allocation8 + $0x58] sm:$0xff] }
  0xc7   : > { %1821 = vmatpush3.bf16.msra.mxu1 %v2550_v40 }
  0xc8   : > { %1855 = vmatprep.subr.bf16.mxu1 %v1854_v26 }
 0x17b   : > { %v1352_v41 = vpop.f32.mrb[0].mxu0 }
 0x17c   : > { %v1353_v42 = vpop.f32.mrb[1].mxu0 }
 0x17d   : > { %v1534_v43 = vpop.f32.mrb[0].mxu1  ;;  %v1354_v44 = vadd.f32 %v1353_v42, %v1352_v41  ;;  %v808_v41 = vld [vmem:[#allocation8 + $0xa8] sm:$0xff]  ;;  %v1858_v42 = vpack.c.bf16 %v822_v38, %v821_v35  ;;  %v817_v35 = vld [vmem:[#allocation8 + $0xf0] sm:$0xff] }
 0x17e   : > { %v583_v45 = vpop.f32.mrb[1].mxu1  ;;  %v801_v38 = vld [vmem:[#allocation8 + $0x70] sm:$0xff] }
 0x17f   : > { %v584_v46 = vadd.f32 %v1354_v44, %v583_v45  ;;  %v1355_v47 = vpop.f32.mrb[2].mxu0  ;;  %v791_v44 = vld [vmem:[#allocation8 + $0x20] sm:$0xff]  ;;  %v792_v45 = vld [vmem:[#allocation8 + $0x28] sm:$0xff] }
 0x180   : > { %v1356_v48 = vpop.f32.mrb[3].mxu0 }
 0x181   : > { %v1357_v49 = vadd.f32 %v1356_v48, %v1355_v47  ;;  %v1832_v47 = vpack.c.bf16 %v792_v45, %v791_v44  ;;  %v824_v48 = vld [vmem:[#allocation8 + $0x128] sm:$0xff] }
 0x183   : > { %v589_v52 = vadd.f32 %v1534_v43, %v1357_v49  ;;  %v1830_v43 = vpack.c.bf16 %v808_v41, %v807_v39  ;;  %v809_v49 = vld [vmem:[#allocation8 + $0xb0] sm:$0xff]  ;;  %v802_v41 = vld [vmem:[#allocation8 + $0x78] sm:$0xff] }
 0x184   : > { %v1852_v44 = vpack.c.bf16 %v802_v41, %v801_v38 }
 0x185   : > { %v592_v53 = vadd.f32 %v589_v52, %v584_v46 }
 0x187   : > { %v593_v54 = vrot.slane %v592_v53, 4 }
 0x189   : > { %v594_v55 = vadd.f32 %v593_v54, %v592_v53 }
 0x18b   : > { %v595_v56 = vrot.slane %v594_v55, 2 }
 0x18d   : > { %v596_v57 = vadd.f32 %v595_v56, %v594_v55  ;;  %v793_v55 = vld [vmem:[#allocation8 + $0x30] sm:$0xff]  ;;  %v794_v56 = vld [vmem:[#allocation8 + $0x38] sm:$0xff] }
 0x18f   : > { %v597_v58 = vrot.slane %v596_v57, 1 }
 0x191   : > { %v598_v59 = vadd.f32 %v597_v58, %v596_v57  ;;  %v825_v57 = vld [vmem:[#allocation8 + $0x130] sm:$0xff]  ;;  %v826_v58 = vld [vmem:[#allocation8 + $0x138] sm:$0xff] }
 0x192   : > { %v1866_v61 = vpack.c.bf16 %v826_v58, %v825_v57 }
 0x193   : > { %1568 = vmatmul.mubr.f32.vlgmr.msra.gmra.mrb[4].mxu0 %v598_v59  ;;  %v811_v59 = vld [vmem:[#allocation8 + $0xc0] sm:$0xff] }
 0x194   : > { %1825 = vmatpush3.bf16.msra.mxu0 %v1824_v23  ;;  %v1844_v23 = vpack.c.bf16 %v798_v16, %v797_v15 }
 0x195   : > { %1827 = vmatprep.subr.bf16.mxu0 %v1826_v30 }
 0x198   : > { %1829 = vmatpush3.bf16.msra.mxu0 %v1828_v36  ;;  %v818_v36 = vld [vmem:[#allocation8 + $0xf8] sm:$0xff] }
 0x199   : > { %1831 = vmatprep.subr.bf16.mxu0 %v1830_v43  ;;  %v1850_v39 = vpack.c.bf16 %v818_v36, %v817_v35  ;;  %v834_v43 = vld [vmem:[#allocation8 + $0x178] sm:$0xff] }
 0x19c   : > { %1833 = vmatpush3.bf16.msra.mxu0 %v1832_v47 }
 0x266   : > { %v665_v63 = vpop.f32.mrb[4].mxu0 }
 0x267   : > { %v672_v1 = vrot.slane %v665_v63, %v2558_v62  ;;  %v1569_v2 = vpop.f32.mrb[5].mxu0  ;;  %v1836_v63 = vpack.c.bf16 %v794_v56, %v793_v55  ;;  %v1310_v56 = vld [vmem:[%s2679_s3] ss:$0 sm:$0xff] }
 0x268   : > { %v828_v2 = vld [vmem:[#allocation8 + $0x148] sm:$0xff] }
 0x269   : > { %v2561_v3 = vsub.f32 %v584_v46, %v672_v1  ;;  %v2563_v4 = vsub.f32 %v589_v52, %v672_v1  ;;  %v823_v46 = vld [vmem:[#allocation8 + $0x120] sm:$0xff]  ;;  %v810_v52 = vld [vmem:[#allocation8 + $0xb8] sm:$0xff] }
 0x26a   : > { %v1862_v53 = vpack.c.bf16 %v824_v48, %v823_v46  ;;  %v1834_v54 = vpack.c.bf16 %v810_v52, %v809_v49  ;;  %v827_v1 = vld [vmem:[#allocation8 + $0x140] sm:$0xff] }
 0x26b   : > { %v675_v5 = vmul.f32 %v2561_v3, %v2561_v3  ;;  %v676_v6 = vmul.f32 %v2563_v4, %v2563_v4 }
 0x26c   : > { %1835 = vmatprep.subr.bf16.mxu0 %v1834_v54 }
 0x26d   : > { %v677_v7 = vadd.f32 %v676_v6, %v675_v5  ;;  %v1838_v5 = vpack.c.bf16 %v812_v60, %v811_v59  ;;  %v795_v6 = vld [vmem:[#allocation8 + $0x40] sm:$0xff]  ;;  %1837 = vmatpush3.bf16.msra.mxu0 %v1836_v63 }
 0x26f   : > { %v678_v8 = vrot.slane %v677_v7, 4  ;;  %1839 = vmatprep.subr.bf16.mxu0 %v1838_v5 }
 0x271   : > { %v679_v9 = vadd.f32 %v678_v8, %v677_v7  ;;  %v796_v7 = vld [vmem:[#allocation8 + $0x48] sm:$0xff]  ;;  %v813_v8 = vld [vmem:[#allocation8 + $0xd0] sm:$0xff] }
 0x273   : > { %v680_v10 = vrot.slane %v679_v9, 2 }
 0x275   : > { %v681_v11 = vadd.f32 %v680_v10, %v679_v9  ;;  %v814_v9 = vld [vmem:[#allocation8 + $0xd8] sm:$0xff]  ;;  %v1870_v10 = vpack.c.bf16 %v828_v2, %v827_v1 }
 0x276   : > { %v1842_v14 = vpack.c.bf16 %v814_v9, %v813_v8 }
 0x277   : > { %v682_v12 = vrot.slane %v681_v11, 1 }
 0x279   : > { %v683_v13 = vadd.f32 %v682_v12, %v681_v11  ;;  %v1840_v11 = vpack.c.bf16 %v796_v7, %v795_v6  ;;  %v829_v12 = vld [vmem:[#allocation8 + $0x150] sm:$0xff] }
 0x27b   : > { %1603 = vmatmul.mubr.f32.vlgmr.msra.gmra.mrb[2].mxu1 %v683_v13  ;;  %v830_v13 = vld [vmem:[#allocation8 + $0x158] sm:$0xff]  ;;  %1841 = vmatpush3.bf16.msra.mxu0 %v1840_v11 }
 0x27c   : > { %1857 = vmatpush3.bf16.msra.mxu1 %v1854_v26  ;;  %v1874_v21 = vpack.c.bf16 %v830_v13, %v829_v12  ;;  %1843 = vmatprep.subr.bf16.mxu0 %v1842_v14  ;;  %v799_v26 = vld [vmem:[#allocation8 + $0x60] sm:$0xff] }
 0x27d   : > { %1859 = vmatprep.subr.bf16.mxu1 %v1858_v42  ;;  %v1848_v30 = vpack.c.bf16 %v800_v27, %v799_v26 }
 0x27f   : > { %1845 = vmatpush3.bf16.msra.mxu0 %v1844_v23 }
 0x280   : > { %1861 = vmatpush3.bf16.msra.mxu1 %v1858_v42  ;;  %1847 = vmatprep.subr.bf16.mxu0 %v1846_v24  ;;  %v833_v42 = vld [vmem:[#allocation8 + $0x170] sm:$0xff] }
 0x281   : > { %1863 = vmatprep.subr.bf16.mxu1 %v1862_v53  ;;  %v1882_v45 = vpack.c.bf16 %v834_v43, %v833_v42  ;;  %v1312_v43 = vld [vmem:[%s2682_s6] ss:$0 sm:$0xff] }
 0x283   : > { %1849 = vmatpush3.bf16.msra.mxu0 %v1848_v30 }
 0x284   : > { %1865 = vmatpush3.bf16.msra.mxu1 %v1862_v53  ;;  %1851 = vmatprep.subr.bf16.mxu0 %v1850_v39  ;;  %v1309_v53 = vld [vmem:[%s2678_s2] ss:$0 sm:$0xff] }
 0x285   : > { %1867 = vmatprep.subr.bf16.mxu1 %v1866_v61  ;;  %v1311_v39 = vld [vmem:[%s2681_s5] ss:$0 sm:$0xff] }
 0x287   : > { %1853 = vmatpush3.bf16.msra.mxu0 %v1852_v44 }
 0x288   : > { %1869 = vmatpush3.bf16.msra.mxu1 %v1866_v61  ;;  %1886 = vmatprep.subr.bf16.mxu0 %v2219_v17 }
 0x289   : > { %1871 = vmatprep.subr.bf16.mxu1 %v1870_v10 }
 0x28c   : > { %1873 = vmatpush3.bf16.msra.mxu1 %v1870_v10 }
 0x28d   : > { %1875 = vmatprep.subr.bf16.mxu1 %v1874_v21 }
 0x290   : > { %1877 = vmatpush3.bf16.msra.mxu1 %v1874_v21 }
 0x291   : > { %1879 = vmatprep.subr.bf16.mxu1 %v1878_v33 }
 0x294   : > { %1881 = vmatpush3.bf16.msra.mxu1 %v1878_v33 }
 0x295   : > { %1883 = vmatprep.subr.bf16.mxu1 %v1882_v45 }
 0x298   : > { %1885 = vmatpush3.bf16.msra.mxu1 %v1882_v45 }
 0x299   : > { %1910 = vmatprep.subr.bf16.mxu1 %v2219_v17 }
 0x34e   : > { %v750_v46 = vpop.f32.mrb[2].mxu1 }
 0x34f   : > { %v751_v47 = vadd.f32 1e-05, %v750_v46  ;;  %v1604_v48 = vpop.f32.mrb[3].mxu1 }
 0x351   : > { %2018 = vrsqrt.f32 %v751_v47 }
 0x35b   : > { %v2019_v49 = vpop.eup %2018 }
 0x35c   : > { %v758_v52 = vrot.slane %v2019_v49, %v2558_v62 }
 0x35e   : > { %v759_v54 = vmul.f32 %v758_v52, %v2561_v3  ;;  %v760_v55 = vmul.f32 %v758_v52, %v2563_v4 }
 0x360   : > { %v768_v57 = vmul.f32 %v1309_v53, %v759_v54  ;;  %v769_v58 = vmul.f32 %v1309_v53, %v760_v55 }
 0x362   : > { %v777_v59 = vadd.f32 %v1310_v56, %v768_v57  ;;  %v778_v60 = vadd.f32 %v1310_v56, %v769_v58 }
 0x364   : > { %v779_v61 = vmax.f32 %v777_v59, 0.0  ;;  %v780_v63 = vmax.f32 %v778_v60, 0.0 }
 0x366   : > { %781 = vst [vmem:[#allocation2 + $0x1] sm:$0xff] %v779_v61  ;;  %782 = vst [vmem:[#allocation2 + $0x9] sm:$0xff] %v780_v63  ;;  %899 = vmatprep.mubr.f32.mxu0 %v779_v61 }
 0x36d   : > { %v783_v1 = vld [vmem:[#allocation2] sm:$0xff]  ;;  %v786_v5 = vld [vmem:[#allocation2 + $0xa] sm:$0xff] }
 0x36e   : > { %v785_v2 = vld [vmem:[#allocation2 + $0x2] sm:$0xff]  ;;  %900 = vmatmul.mubr.f32.vlgmr.msra.gmra.mrb[6].mxu0 %v783_v1 }
 0x36f   : > { %1637 = vmatprep.mubr.f32.mxu1 %v785_v2  ;;  %904 = vmatprep.mubr.f32.mxu0 %v780_v63  ;;  %v784_v3 = vld [vmem:[#allocation2 + $0x8] sm:$0xff] }
 0x370   : > { %1638 = vmatmul.mubr.f32.vlgmr.msra.gmra.mrb[4].mxu1 %v786_v5  ;;  %1888 = vmatpush3.bf16.msra.mxu0 %v2506_v18 }
 0x371   : > { %1912 = vmatpush3.bf16.msra.mxu1 %v2506_v18  ;;  %1889 = vmatprep.subr.bf16.mxu0 %v2219_v17 }
 0x372   : > { %1913 = vmatprep.subr.bf16.mxu1 %v2219_v17  ;;  %905 = vmatmul.mubr.f32.gmra.mrb[8].mxu0 %v784_v3 }
 0x373   : > { %1707 = vmatprep.mubr.msk.f32.mxu1 %vm2220_vm0, %v2218_v0  ;;  %1672 = vmatprep.mubr.msk.f32.mxu0 %vm2220_vm0, %v2218_v0 }
 0x374   : > { %1891 = vmatpush3.bf16.msra.mxu0 %v2511_v22 }
 0x375   : > { %1915 = vmatpush3.bf16.msra.mxu1 %v2511_v22  ;;  %1892 = vmatprep.subr.bf16.mxu0 %v2219_v17 }
 0x376   : > { %1916 = vmatprep.subr.bf16.mxu1 %v2219_v17 }
 0x378   : > { %1894 = vmatpush3.bf16.msra.mxu0 %v2520_v25 }
 0x379   : > { %1918 = vmatpush3.bf16.msra.mxu1 %v2520_v25  ;;  %1895 = vmatprep.subr.bf16.mxu0 %v2219_v17 }
 0x37a   : > { %1919 = vmatprep.subr.bf16.mxu1 %v2219_v17 }
 0x37c   : > { %1897 = vmatpush3.bf16.msra.mxu0 %v2526_v28 }
 0x37d   : > { %1921 = vmatpush3.bf16.msra.mxu1 %v2526_v28  ;;  %1898 = vmatprep.subr.bf16.mxu0 %v2219_v17 }
 0x37e   : > { %1922 = vmatprep.subr.bf16.mxu1 %v2219_v17 }
 0x380   : > { %1900 = vmatpush3.bf16.msra.mxu0 %v2532_v31 }
 0x381   : > { %1924 = vmatpush3.bf16.msra.mxu1 %v2532_v31  ;;  %1901 = vmatprep.subr.bf16.mxu0 %v2219_v17 }
 0x382   : > { %1925 = vmatprep.subr.bf16.mxu1 %v2219_v17 }
 0x384   : > { %1903 = vmatpush3.bf16.msra.mxu0 %v2538_v34 }
 0x385   : > { %1927 = vmatpush3.bf16.msra.mxu1 %v2538_v34  ;;  %1904 = vmatprep.subr.bf16.mxu0 %v2219_v17 }
 0x386   : > { %1928 = vmatprep.subr.bf16.mxu1 %v2219_v17 }
 0x388   : > { %1906 = vmatpush3.bf16.msra.mxu0 %v2544_v37 }
 0x389   : > { %1930 = vmatpush3.bf16.msra.mxu1 %v2544_v37  ;;  %1907 = vmatprep.subr.bf16.mxu0 %v2219_v17 }
 0x38a   : > { %1931 = vmatprep.subr.bf16.mxu1 %v2219_v17 }
 0x38c   : > { %1909 = vmatpush3.bf16.msra.mxu0 %v2550_v40 }
 0x38d   : > { %1933 = vmatpush3.bf16.msra.mxu1 %v2550_v40 }
 0x441   : > { %v1442_v0 = vpop.f32.mrb[6].mxu0 }
 0x442   : > { %v1443_v18 = vpop.f32.mrb[7].mxu0 }
 0x443   : > { %v1639_v22 = vpop.f32.mrb[4].mxu1  ;;  %v1444_v25 = vadd.f32 %v1443_v18, %v1442_v0 }
 0x444   : > { %v976_v28 = vpop.f32.mrb[5].mxu1 }
 0x445   : > { %v977_v31 = vadd.f32 %v1444_v25, %v976_v28  ;;  %v1445_v34 = vpop.f32.mrb[8].mxu0 }
 0x446   : > { %v1446_v4 = vpop.f32.mrb[9].mxu0 }
 0x447   : > { %v1447_v6 = vadd.f32 %v1446_v4, %v1445_v34 }
 0x449   : > { %v982_v7 = vadd.f32 %v1639_v22, %v1447_v6 }
 0x44b   : > { %v985_v8 = vadd.f32 %v982_v7, %v977_v31 }
 0x44d   : > { %v986_v37 = vrot.slane %v985_v8, 4 }
 0x44f   : > { %v987_v9 = vadd.f32 %v986_v37, %v985_v8 }
 0x451   : > { %v988_v10 = vrot.slane %v987_v9, 2 }
 0x453   : > { %v989_v11 = vadd.f32 %v988_v10, %v987_v9 }
 0x455   : > { %v990_v17 = vrot.slane %v989_v11, 1 }
 0x457   : > { %v991_v12 = vadd.f32 %v990_v17, %v989_v11 }
 0x459   : > { %1673 = vmatmul.mubr.f32.vlgmr.msra.gmra.mrb[10].mxu0 %v991_v12 }
 0x52c   : > { %v1058_v13 = vpop.f32.mrb[10].mxu0 }
 0x52d   : > { %v1065_v40 = vrot.slane %v1058_v13, %v2558_v62  ;;  %v1674_v14 = vpop.f32.mrb[11].mxu0 }
 0x52f   : > { %v1066_v15 = vsub.f32 %v977_v31, %v1065_v40  ;;  %v1067_v16 = vsub.f32 %v982_v7, %v1065_v40 }
 0x531   : > { %v1068_v19 = vmul.f32 %v1066_v15, %v1066_v15  ;;  %v1069_v20 = vmul.f32 %v1067_v16, %v1067_v16 }
 0x533   : > { %v1070_v21 = vadd.f32 %v1069_v20, %v1068_v19 }
 0x535   : > { %v1071_v23 = vrot.slane %v1070_v21, 4 }
 0x537   : > { %v1072_v24 = vadd.f32 %v1071_v23, %v1070_v21 }
 0x539   : > { %v1073_v26 = vrot.slane %v1072_v24, 2 }
 0x53b   : > { %v1074_v27 = vadd.f32 %v1073_v26, %v1072_v24 }
 0x53d   : > { %v1075_v29 = vrot.slane %v1074_v27, 1 }
 0x53f   : > { %v1076_v30 = vadd.f32 %v1075_v29, %v1074_v27 }
 0x541   : > { %1708 = vmatmul.mubr.f32.vlgmr.msra.gmra.mrb[6].mxu1 %v1076_v30 }
 0x614   : > { %v1143_v32 = vpop.f32.mrb[6].mxu1 }
 0x615   : > { %v1144_v33 = vadd.f32 1e-05, %v1143_v32  ;;  %v1709_v35 = vpop.f32.mrb[7].mxu1 }
 0x617   : > { %2020 = vrsqrt.f32 %v1144_v33 }
 0x621   : > { %v2021_v36 = vpop.eup %2020 }
 0x622   : > { %v1151_v38 = vrot.slane %v2021_v36, %v2558_v62 }
 0x624   : > { %v1152_v41 = vmul.f32 %v1151_v38, %v1066_v15  ;;  %v1153_v42 = vmul.f32 %v1151_v38, %v1067_v16 }
 0x626   : > { %v1161_v44 = vmul.f32 %v1311_v39, %v1152_v41  ;;  %v1162_v45 = vmul.f32 %v1311_v39, %v1153_v42 }
 0x628   : > { %v1170_v46 = vadd.f32 %v1312_v43, %v1161_v44  ;;  %v1171_v62 = vadd.f32 %v1312_v43, %v1162_v45 }
 0x62a   : > { %v1174_v47 = vadd.f32 %v1170_v46, %v2497_v50  ;;  %v1175_v48 = vadd.f32 %v1171_v62, %v2500_v51 }
 0x62c   : > { %1176 = vst [vmem:[%s367_s20] sm:$0xff] %v1174_v47  ;;  %1177 = vst [vmem:[%s367_s20 + $0x8] sm:$0xff] %v1175_v48 }
 0x62d   : > { %2149 = shalt.err (!%p2146_p4)
}
 0x62e   : > { %s2150_s17 = scalar_lea.hbm %s2628_s11, 256  ;;  %s2154_s24 = scalar_lea.hbm %s2684_s8, 512 }
 0x62f   : > { %p2151_p9 = scmp.ne.s32.totalorder %s2628_s11, %s2150_s17  ;;  %p2155_p8 = scmp.lt.u32.totalorder %s2628_s11, %s2684_s8 }
 0x630   : > { %p2156_p13 = scmp.lt.u32.totalorder %s2154_s24, %s2150_s17  ;;  %p2158_p10 = scmp.lt.u32.totalorder %s2150_s17, %s2628_s11 }
 0x631   : > { %p2152_p0 = pnand %p2151_p9, %p2423_p5 }
 0x632   : > { %p2157_p6 = por %p2156_p13, %p2155_p8 }
 0x633   : > { %p2153_p11 = pneg %p2152_p0 }
 0x634   : > { %p2159_p3 = por %p2158_p10, %p2157_p6 }
 0x636   : > { %p2160_p7 = pnand %p2159_p3, %p2153_p11 }
 0x638   : > { %2163 = shalt.err (!%p2160_p7)
}
 0x639   : > { %s2222_s15 = smov 128   ;;  %s2223_s27 = smov 8  }
 0x63a   : > { %1948 = dma.vmem_to_hbm [thread:$0]  (%p2423_p5), %s2630_s14, 256, %s2628_s11, %s1179_s9, %s2222_s15, %s2222_s15, %s2223_s27  }
 0x63b PF: > { %s2706_s10 = sld [smem:[#allocation16_spill]]  ;;  %s2707_s13 = sld [smem:[#allocation17_spill]] }
 0x63c   : > { %p2709_p1 = scmp.ge.s32.totalorder %s2210_s30, 2 }
 0x641   : > { %s1207_s19 = sand.u32 1, %s2706_s10   ;;  %p2708_p12 = scmp.ne.s32.totalorder %s2707_s13, 0 }
 0x642   : > { %s1208_s21 = scalar_lea.sflag [#allocation5], %s1207_s19 }
 0x643   : > { %p1965_p2 = pnand %p2709_p1, %p2708_p12 }
 0x645   : > { %2193 = dma.done.wait (!%p1965_p2), %s1208_s21, 256  }
 0x646   : > { %2195 = vsyncadd (!%p1965_p2), %s1208_s21, 4294967040  ;;  %p23_p4 = scmp.ge.s32.totalorder %s2409_s26, 4   ;;  %s2710_s27 = smov %s2202_s28 }
 0x647   : > { %s2711_s28 = smov %s2206_s29  ;;  %s2712_s29 = smov %s2419_s22 }
 0x648   : > { %s2713_s30 = smov %s2409_s26  ;;  %25 = sbr.rel (!%p23_p4) target bundleno = 7 (0x7), region = 109 }
 0x64f   :  { %1213 = vsyncpa [#allocation4], 1 }
 0x650   :  { %1215 = vsyncpa [#allocation4 + $0x1], 1 }
 0x651   :  { %1216 = vsyncpa [#allocation7], 1 }
 0x652   :  { %1217 = vsyncpa [#allocation10], 1 }
 0x653   :  { %1218 = vsyncpa [#allocation5], 1 }
 0x654   :  { %1220 = vsyncpa [#allocation5 + $0x1], 1 }

</bundles_post_ra>
